<compile_context>
chip_gen: v5e
topology: v5e:2x2
jax: 0.10.0
libtpu: 0.0.40
codegen_flags: <defaults>
</compile_context>

<pallas_src>
import functools

import jax
import jax.numpy as jnp
from jax import lax
from jax.experimental import pallas as pl
from jax.experimental.pallas import tpu as pltpu

LN_EPS = 1e-5


def _round_up(x, m):
    return ((x + m - 1) // m) * m


def _decoder_rescat_kernel(x_ref, w1_ref, b1_ref, g_ref, beta_ref,
                           wfx_ref, wfm_ref, bf_ref, o_ref):
    # x tile: (TM, in_features); all math in f32 regardless of input dtype
    # (v5e has no bf16 VPU/EUP; MXU accumulates f32 on all generations).
    x = x_ref[...].astype(jnp.float32)

    # --- MLP: Linear -> LayerNorm -> ReLU, fused in VMEM ---
    h = jnp.dot(x, w1_ref[...], preferred_element_type=jnp.float32) + b1_ref[...]
    mu = jnp.mean(h, axis=-1, keepdims=True)
    d = h - mu
    var = jnp.mean(d * d, axis=-1, keepdims=True)      # two-pass: torch parity
    h = d * lax.rsqrt(var + LN_EPS)
    h = jnp.maximum(h * g_ref[...] + beta_ref[...], 0.0)

    # --- fc over the concatenation, as two MXU matmuls into one accumulator ---
    out = (jnp.dot(x, wfx_ref[...], preferred_element_type=jnp.float32)
           + jnp.dot(h, wfm_ref[...], preferred_element_type=jnp.float32)
           + bf_ref[...])
    o_ref[...] = out.astype(o_ref.dtype)


def _const_spec(arr):
    """Whole-array block, same index every step -> fetched once, VMEM-resident.

    A single buffer suffices (constant index map), so request Buffered(1);
    fall back silently on jax versions without the pipeline_mode kwarg.
    """
    try:
        return pl.BlockSpec(arr.shape, lambda i: (0, 0),
                            pipeline_mode=pl.Buffered(1))
    except Exception:
        return pl.BlockSpec(arr.shape, lambda i: (0, 0))


def decoder_rescat(hidden_states, params, *, tile_rows=8192,
                   xla_fallback_rows=256):
    """hidden_states: [..., in_features]  ->  [..., out_features]."""
    w1, b1, gamma, beta, wfc, bfc = (
        params["mlp_w"], params["mlp_b"], params["ln_g"], params["ln_b"],
        params["fc_w"], params["fc_b"])

    in_features = w1.shape[1]            # torch Linear weight: (out, in)
    hidden_size = w1.shape[0]
    out_features = wfc.shape[0]
    assert hidden_states.shape[-1] == in_features
    assert tile_rows % 8 == 0

    lead_shape = hidden_states.shape[:-1]
    x = hidden_states.reshape(-1, in_features)   # no pad, no dtype cast
    n_rows = x.shape[0]

    # Tiny batches: a 1-step grid pays full launch + step overhead for a few
    # KiB; the fused XLA path is faster there.
    if n_rows < xla_fallback_rows:
        return _reference(hidden_states, params).astype(hidden_states.dtype)

    # Big sublane tile (multiple of 8), clamped for small inputs.
    tm = min(tile_rows, _round_up(n_rows, 8))
    # Keep >=4 grid steps when rows allow so the "parallel" row axis shards
    # across v7x's two TensorCores; 2048-row floor keeps the ~0.35 us per-step
    # overhead amortized on v5e/v6e.
    if n_rows > 4 * 2048:
        tm = min(tm, max(2048, _round_up(pl.cdiv(n_rows, 4), 8)))
    grid = (pl.cdiv(n_rows, tm),)

    # Pre-transpose weights so the kernel does (rows, K) @ (K, N).
    w1_t = jnp.transpose(w1)                          # (in, hidden)
    wfx_t = jnp.transpose(wfc[:, :in_features])       # (in, out)
    wfm_t = jnp.transpose(wfc[:, in_features:])       # (hidden, out)
    b1_2d = b1.reshape(1, hidden_size)
    g_2d = gamma.reshape(1, hidden_size)
    beta_2d = beta.reshape(1, hidden_size)
    bf_2d = bfc.reshape(1, out_features)

    weights = (w1_t, b1_2d, g_2d, beta_2d, wfx_t, wfm_t, bf_2d)
    weight_bytes = sum(int(a.size) * a.dtype.itemsize for a in weights)
    flops_per_row = (2 * in_features * hidden_size                     # MLP
                     + 8 * hidden_size                                 # LN+ReLU
                     + 2 * (in_features + hidden_size) * out_features)  # fc
    cost = pl.CostEstimate(
        flops=int(n_rows * flops_per_row),
        transcendentals=int(n_rows),               # one rsqrt per row
        bytes_accessed=int(n_rows * in_features * x.dtype.itemsize
                           + n_rows * out_features
                           * jnp.dtype(hidden_states.dtype).itemsize
                           + weight_bytes))

    out = pl.pallas_call(
        _decoder_rescat_kernel,
        out_shape=jax.ShapeDtypeStruct((n_rows, out_features),
                                       hidden_states.dtype),
        grid_spec=pltpu.PrefetchScalarGridSpec(
            num_scalar_prefetch=0,
            grid=grid,
            in_specs=[
                pl.BlockSpec((tm, in_features), lambda i: (i, 0)),   # x rows
                _const_spec(w1_t),
                _const_spec(b1_2d),
                _const_spec(g_2d),
                _const_spec(beta_2d),
                _const_spec(wfx_t),
                _const_spec(wfm_t),
                _const_spec(bf_2d),
            ],
            out_specs=pl.BlockSpec((tm, out_features), lambda i: (i, 0)),
        ),
        compiler_params=pltpu.CompilerParams(
            dimension_semantics=("parallel",)),
        cost_estimate=cost,
    )(x, *weights)

    return out.reshape(*lead_shape, out_features)


def init_params(key, in_features, hidden_size, out_features):
    """Deterministic synthetic params matching the torch module's shapes."""
    k1, k2, k3, k4 = jax.random.split(key, 4)
    scale1 = 1.0 / jnp.sqrt(in_features)
    scale2 = 1.0 / jnp.sqrt(hidden_size + in_features)
    return {
        "mlp_w": jax.random.uniform(k1, (hidden_size, in_features),
                                    minval=-scale1, maxval=scale1,
                                    dtype=jnp.float32),
        "mlp_b": jax.random.uniform(k2, (hidden_size,),
                                    minval=-scale1, maxval=scale1,
                                    dtype=jnp.float32),
        "ln_g": jnp.ones((hidden_size,), jnp.float32),
        "ln_b": jnp.zeros((hidden_size,), jnp.float32),
        "fc_w": jax.random.uniform(k3, (out_features, hidden_size + in_features),
                                   minval=-scale2, maxval=scale2,
                                   dtype=jnp.float32),
        "fc_b": jax.random.uniform(k4, (out_features,),
                                   minval=-scale2, maxval=scale2,
                                   dtype=jnp.float32),
    }


def _reference(x, p):
    """Plain-JAX reference of the torch forward pass (for verification)."""
    h = x @ p["mlp_w"].T + p["mlp_b"]
    mu = h.mean(-1, keepdims=True)
    var = ((h - mu) ** 2).mean(-1, keepdims=True)
    h = (h - mu) / jnp.sqrt(var + LN_EPS) * p["ln_g"] + p["ln_b"]
    h = jnp.maximum(h, 0.0)
    cat = jnp.concatenate([x, h], axis=-1)
    return cat @ p["fc_w"].T + p["fc_b"]


if __name__ == "__main__":
    key = jax.random.PRNGKey(0)
    k_in1, k_in2, k_p = jax.random.split(key, 3)

    in_features, hidden_size, out_features = 32, 64, 60
    params = init_params(k_p, in_features, hidden_size, out_features)

    # Force the Pallas path even at tiny test shapes (xla_fallback_rows=0).
    fwd = jax.jit(functools.partial(decoder_rescat, tile_rows=8192,
                                    xla_fallback_rows=0))

    # Case 1: batch=2, seq=8 (16 rows) -- single full block.
    x1 = jax.random.normal(k_in1, (2, 8, in_features), dtype=jnp.float32)
    out1 = jax.block_until_ready(fwd(x1, params))
    ref1 = _reference(x1, params)
    assert out1.shape == (2, 8, out_features)
    assert jnp.allclose(out1, ref1, atol=1e-4, rtol=1e-4)

    # Case 2: 2*100 = 200 rows (not a multiple of 8) -- exercises masked tail.
    x2 = jax.random.normal(k_in2, (2, 100, in_features), dtype=jnp.float32)
    out2 = jax.block_until_ready(fwd(x2, params))
    ref2 = _reference(x2, params)
    assert out2.shape == (2, 100, out_features)
    assert jnp.allclose(out2, ref2, atol=1e-4, rtol=1e-4)

    print("KERNEL_OK")
</pallas_src>

<mosaic_0001>
module attributes {stable_mosaic.version = 11 : i64} {
  func.func @_decoder_rescat_kernel(%arg0: i32, %arg1: memref<16x32xf32, #tpu.memory_space<vmem>>, %arg2: memref<32x64xf32, #tpu.memory_space<vmem>>, %arg3: memref<1x64xf32, #tpu.memory_space<vmem>>, %arg4: memref<1x64xf32, #tpu.memory_space<vmem>>, %arg5: memref<1x64xf32, #tpu.memory_space<vmem>>, %arg6: memref<32x60xf32, #tpu.memory_space<vmem>>, %arg7: memref<64x60xf32, #tpu.memory_space<vmem>>, %arg8: memref<1x60xf32, #tpu.memory_space<vmem>>, %arg9: memref<16x60xf32, #tpu.memory_space<vmem>>) attributes {dimension_semantics = [#tpu.dimension_semantics<parallel>], iteration_bounds = array<i64: 1>, scalar_prefetch = 0 : i64, scratch_operands = 0 : i64, tpu.core_type = #tpu.core_type<tc>, window_params = [{transform_indices = @transform_0, window_bounds = array<i64: 16, 32>}, {pipeline_mode = #tpu.pipeline_mode<synchronous>, transform_indices = @transform_1, window_bounds = array<i64: 32, 64>}, {pipeline_mode = #tpu.pipeline_mode<synchronous>, transform_indices = @transform_2, window_bounds = array<i64: 1, 64>}, {pipeline_mode = #tpu.pipeline_mode<synchronous>, transform_indices = @transform_3, window_bounds = array<i64: 1, 64>}, {pipeline_mode = #tpu.pipeline_mode<synchronous>, transform_indices = @transform_4, window_bounds = array<i64: 1, 64>}, {pipeline_mode = #tpu.pipeline_mode<synchronous>, transform_indices = @transform_5, window_bounds = array<i64: 32, 60>}, {pipeline_mode = #tpu.pipeline_mode<synchronous>, transform_indices = @transform_6, window_bounds = array<i64: 64, 60>}, {pipeline_mode = #tpu.pipeline_mode<synchronous>, transform_indices = @transform_7, window_bounds = array<i64: 1, 60>}, {transform_indices = @transform_8, window_bounds = array<i64: 16, 60>}]} {
    %c0 = arith.constant 0 : index
    %c0_0 = arith.constant 0 : index
    %0 = vector.load %arg1[%c0, %c0_0] : memref<16x32xf32, #tpu.memory_space<vmem>>, vector<16x32xf32>
    %c0_1 = arith.constant 0 : index
    %c0_2 = arith.constant 0 : index
    %1 = vector.load %arg2[%c0_1, %c0_2] : memref<32x64xf32, #tpu.memory_space<vmem>>, vector<32x64xf32>
    %cst = arith.constant dense<0.000000e+00> : vector<16x64xf32>
    %2 = tpu.matmul %0, %1, %cst {dimension_numbers = #tpu.dot_dimension_numbers<[1], [0], [0], [1], [0, 0, 1, 1], [], []>} : vector<16x32xf32>, vector<32x64xf32>, vector<16x64xf32> -> vector<16x64xf32>
    %c0_3 = arith.constant 0 : index
    %c0_4 = arith.constant 0 : index
    %3 = vector.load %arg3[%c0_3, %c0_4] : memref<1x64xf32, #tpu.memory_space<vmem>>, vector<1x64xf32>
    %4 = vector.broadcast %3 : vector<1x64xf32> to vector<16x64xf32>
    %5 = arith.addf %2, %4 : vector<16x64xf32>
    %cst_5 = arith.constant dense<0.000000e+00> : vector<16xf32>
    %6 = vector.multi_reduction <add>, %5, %cst_5 [1] : vector<16x64xf32> to vector<16xf32>
    %7 = vector.shape_cast %6 : vector<16xf32> to vector<16x1xf32>
    %cst_6 = arith.constant 6.400000e+01 : f32
    %8 = vector.broadcast %cst_6 : f32 to vector<16x1xf32>
    %9 = arith.divf %7, %8 : vector<16x1xf32>
    %10 = vector.broadcast %9 : vector<16x1xf32> to vector<16x64xf32>
    %11 = arith.subf %5, %10 : vector<16x64xf32>
    %12 = arith.mulf %11, %11 : vector<16x64xf32>
    %cst_7 = arith.constant dense<0.000000e+00> : vector<16xf32>
    %13 = vector.multi_reduction <add>, %12, %cst_7 [1] : vector<16x64xf32> to vector<16xf32>
    %14 = vector.shape_cast %13 : vector<16xf32> to vector<16x1xf32>
    %cst_8 = arith.constant 6.400000e+01 : f32
    %15 = vector.broadcast %cst_8 : f32 to vector<16x1xf32>
    %16 = arith.divf %14, %15 : vector<16x1xf32>
    %cst_9 = arith.constant 9.99999974E-6 : f32
    %17 = vector.broadcast %cst_9 : f32 to vector<16x1xf32>
    %18 = arith.addf %16, %17 : vector<16x1xf32>
    %19 = math.rsqrt %18 : vector<16x1xf32>
    %20 = vector.broadcast %19 : vector<16x1xf32> to vector<16x64xf32>
    %21 = arith.mulf %11, %20 : vector<16x64xf32>
    %c0_10 = arith.constant 0 : index
    %c0_11 = arith.constant 0 : index
    %22 = vector.load %arg4[%c0_10, %c0_11] : memref<1x64xf32, #tpu.memory_space<vmem>>, vector<1x64xf32>
    %23 = vector.broadcast %22 : vector<1x64xf32> to vector<16x64xf32>
    %24 = arith.mulf %21, %23 : vector<16x64xf32>
    %c0_12 = arith.constant 0 : index
    %c0_13 = arith.constant 0 : index
    %25 = vector.load %arg5[%c0_12, %c0_13] : memref<1x64xf32, #tpu.memory_space<vmem>>, vector<1x64xf32>
    %26 = vector.broadcast %25 : vector<1x64xf32> to vector<16x64xf32>
    %27 = arith.addf %24, %26 : vector<16x64xf32>
    %cst_14 = arith.constant 0.000000e+00 : f32
    %28 = vector.broadcast %cst_14 : f32 to vector<16x64xf32>
    %29 = arith.maximumf %27, %28 : vector<16x64xf32>
    %c0_15 = arith.constant 0 : index
    %c0_16 = arith.constant 0 : index
    %30 = vector.load %arg6[%c0_15, %c0_16] : memref<32x60xf32, #tpu.memory_space<vmem>>, vector<32x60xf32>
    %cst_17 = arith.constant dense<0.000000e+00> : vector<16x60xf32>
    %31 = tpu.matmul %0, %30, %cst_17 {dimension_numbers = #tpu.dot_dimension_numbers<[1], [0], [0], [1], [0, 0, 1, 1], [], []>} : vector<16x32xf32>, vector<32x60xf32>, vector<16x60xf32> -> vector<16x60xf32>
    %c0_18 = arith.constant 0 : index
    %c0_19 = arith.constant 0 : index
    %32 = vector.load %arg7[%c0_18, %c0_19] : memref<64x60xf32, #tpu.memory_space<vmem>>, vector<64x60xf32>
    %cst_20 = arith.constant dense<0.000000e+00> : vector<16x60xf32>
    %33 = tpu.matmul %29, %32, %cst_20 {dimension_numbers = #tpu.dot_dimension_numbers<[1], [0], [0], [1], [0, 0, 1, 1], [], []>} : vector<16x64xf32>, vector<64x60xf32>, vector<16x60xf32> -> vector<16x60xf32>
    %34 = arith.addf %31, %33 : vector<16x60xf32>
    %c0_21 = arith.constant 0 : index
    %c0_22 = arith.constant 0 : index
    %35 = vector.load %arg8[%c0_21, %c0_22] : memref<1x60xf32, #tpu.memory_space<vmem>>, vector<1x60xf32>
    %36 = vector.broadcast %35 : vector<1x60xf32> to vector<16x60xf32>
    %37 = arith.addf %34, %36 : vector<16x60xf32>
    %c0_23 = arith.constant 0 : index
    %c0_24 = arith.constant 0 : index
    %38 = vector.load %arg9[%c0_23, %c0_24] : memref<16x60xf32, #tpu.memory_space<vmem>>, vector<16x60xf32>
    tpu.vector_store %arg9[%c0_23, %c0_24], %37 {strides = array<i32>} : memref<16x60xf32, #tpu.memory_space<vmem>>, vector<16x60xf32>,
    return
  }
  func.func @transform_0(%arg0: i32) -> (i32, i32) {
    %c0_i32 = arith.constant 0 : i32
    %c0_i32_0 = arith.constant 0 : i32
    return %arg0, %c0_i32 : i32, i32
  }
  func.func @transform_1(%arg0: i32) -> (i32, i32) {
    %c0_i32 = arith.constant 0 : i32
    %c0_i32_0 = arith.constant 0 : i32
    %c0_i32_1 = arith.constant 0 : i32
    return %c0_i32, %c0_i32_0 : i32, i32
  }
  func.func @transform_2(%arg0: i32) -> (i32, i32) {
    %c0_i32 = arith.constant 0 : i32
    %c0_i32_0 = arith.constant 0 : i32
    %c0_i32_1 = arith.constant 0 : i32
    return %c0_i32, %c0_i32_0 : i32, i32
  }
  func.func @transform_3(%arg0: i32) -> (i32, i32) {
    %c0_i32 = arith.constant 0 : i32
    %c0_i32_0 = arith.constant 0 : i32
    %c0_i32_1 = arith.constant 0 : i32
    return %c0_i32, %c0_i32_0 : i32, i32
  }
  func.func @transform_4(%arg0: i32) -> (i32, i32) {
    %c0_i32 = arith.constant 0 : i32
    %c0_i32_0 = arith.constant 0 : i32
    %c0_i32_1 = arith.constant 0 : i32
    return %c0_i32, %c0_i32_0 : i32, i32
  }
  func.func @transform_5(%arg0: i32) -> (i32, i32) {
    %c0_i32 = arith.constant 0 : i32
    %c0_i32_0 = arith.constant 0 : i32
    %c0_i32_1 = arith.constant 0 : i32
    return %c0_i32, %c0_i32_0 : i32, i32
  }
  func.func @transform_6(%arg0: i32) -> (i32, i32) {
    %c0_i32 = arith.constant 0 : i32
    %c0_i32_0 = arith.constant 0 : i32
    %c0_i32_1 = arith.constant 0 : i32
    return %c0_i32, %c0_i32_0 : i32, i32
  }
  func.func @transform_7(%arg0: i32) -> (i32, i32) {
    %c0_i32 = arith.constant 0 : i32
    %c0_i32_0 = arith.constant 0 : i32
    %c0_i32_1 = arith.constant 0 : i32
    return %c0_i32, %c0_i32_0 : i32, i32
  }
  func.func @transform_8(%arg0: i32) -> (i32, i32) {
    %c0_i32 = arith.constant 0 : i32
    %c0_i32_0 = arith.constant 0 : i32
    return %arg0, %c0_i32 : i32, i32
  }
}

</mosaic_0001>

<bundles_post_ra>
// kernel: decoder_rescat.1
= control target key start
LH: loop header
LB: loop body
LE: loop exit
PB: predicated region body
PF: predicated region fallthrough
CT: control target
= control target key end

     0   :  { %s423_s0 = inlined_call_operand.vmem [shape: f32[16,32], index: 0, kind: input, shape index: {}]   ;;  %s424_s1 = inlined_call_operand.vmem [shape: f32[32,64], index: 1, kind: input, shape index: {}]   ;;  %s425_s2 = inlined_call_operand.vmem [shape: f32[1,64], index: 2, kind: input, shape index: {}]   ;;  %s426_s3 = inlined_call_operand.vmem [shape: f32[1,64], index: 3, kind: input, shape index: {}]   ;;  %s427_s4 = inlined_call_operand.vmem [shape: f32[1,64], index: 4, kind: input, shape index: {}]   ;;  %s428_s5 = inlined_call_operand.vmem [shape: f32[32,60], index: 5, kind: input, shape index: {}]   ;;  %s429_s6 = inlined_call_operand.vmem [shape: f32[64,60], index: 6, kind: input, shape index: {}]   ;;  %s430_s7 = inlined_call_operand.vmem [shape: f32[1,60], index: 7, kind: input, shape index: {}]   ;;  %s431_s8 = inlined_call_operand.hbm [shape: f32[16,60], index: 8, kind: output, shape index: {}]  }
   0x1   :  { %v35_v0 = vld [vmem:[%s424_s1 + $0x18] sm:$0xff]  ;;  %v34_v1 = vld [vmem:[%s424_s1 + $0x10] sm:$0xff]  ;;  %v33_v2 = vld [vmem:[%s424_s1 + $0x8] sm:$0xff] }
   0x2   :  { %59 = vmatpush.msra.mxu0 %v35_v0 }
   0x4   :  { %60 = vmatpush.msra.mxu0 %v34_v1 }
   0x5   :  { %13 = vsyncpa [#allocation3], 0  ;;  %v32_v3 = vld [vmem:[%s424_s1] sm:$0xff]  ;;  %vm40_vm0 = vcmask 261120   ;;  %v349_v5 = vld [vmem:[%s423_s0 + $0x8] sm:$0xff]  ;;  %vm70_vm1 = vcmask 523264  }
   0x6   :  { %61 = vmatpush.msra.mxu0 %v33_v2  ;;  %v30_v4 = vld [vmem:[%s423_s0] sm:$0xff]  ;;  %v281_v13 = vmov 64.0   ;;  %v147_v30 = vld [vmem:[%s429_s6 + $0x38] sm:$0xff]  ;;  %v146_v32 = vld [vmem:[%s429_s6 + $0x30] sm:$0xff]  ;;  %s215_s21 = sshll.u32 %s431_s8, 4  ;;  %vm206_vm9 = vcmask 490496   ;;  %s216_s21 = int_to_ptr.hbm [resolvable:$true] %s215_s21 }
   0x7   :  { %v245_v7 = vld [vmem:[%s425_s2] ss:$0 sm:$0xff]  ;;  %249 = vrcp.f32 %v281_v13  ;;  %v139_v31 = vld [vmem:[%s428_s5 + $0x18] sm:$0xff]  ;;  %233 = vmatpush.msra.mxu3 %v147_v30  ;;  %v138_v33 = vld [vmem:[%s428_s5 + $0x10] sm:$0xff]  ;;  %162 = vmatpush.msra.mxu1 %v147_v30  ;;  %s282_s2 = smov [#allocation2]   ;;  %s283_s22 = smov 128  }
   0x8   :  { %62 = vmatpush.msra.mxu0 %v32_v3  ;;  %189 = vmatpush.msra.mxu2 %v139_v31  ;;  %v145_v34 = vld [vmem:[%s429_s6 + $0x28] sm:$0xff]  ;;  %v144_v36 = vld [vmem:[%s429_s6 + $0x20] sm:$0xff]  ;;  %v143_v38 = vld [vmem:[%s429_s6 + $0x18] sm:$0xff]  ;;  %s213_s18 = sshll.u32 %s282_s2, 4  ;;  %s284_s23 = smov 8   ;;  %s214_s18 = int_to_ptr.vmem [resolvable:$true] %s213_s18 }
   0x9   :  { %227 = vmatmul.msk.f32.vlgmr.msra.gmra.mxu0 %vm40_vm0, %v30_v4  ;;  %234 = vmatpush.msra.mxu3 %v146_v32  ;;  %v137_v35 = vld [vmem:[%s428_s5 + $0x8] sm:$0xff]  ;;  %v136_v37 = vld [vmem:[%s428_s5] sm:$0xff]  ;;  %v142_v39 = vld [vmem:[%s429_s6 + $0x10] sm:$0xff] }
   0xa   :  { %190 = vmatpush.msra.mxu2 %v138_v33  ;;  %163 = vmatpush.msra.mxu1 %v146_v32  ;;  %v141_v40 = vld [vmem:[%s429_s6 + $0x8] sm:$0xff]  ;;  %v140_v41 = vld [vmem:[%s429_s6] sm:$0xff] }
   0xb   :  { %235 = vmatpush.msra.mxu3 %v145_v34  ;;  %v246_v56 = vld [vmem:[%s426_s3] ss:$0 sm:$0xff] }
   0xc   :  { %191 = vmatpush.msra.mxu2 %v137_v35  ;;  %164 = vmatpush.msra.mxu1 %v145_v34  ;;  %v247_v60 = vld [vmem:[%s427_s4] ss:$0 sm:$0xff] }
   0xd   :  { %v250_v14 = vpop.eup %249  ;;  %236 = vmatpush.msra.mxu3 %v144_v36 }
   0xe   :  { %v78_v15 = vmul.f32 64.0, %v250_v14  ;;  %vm82_vm2 = vweird.f32 %v250_v14  ;;  %192 = vmatpush.msra.mxu2 %v136_v37  ;;  %165 = vmatpush.msra.mxu1 %v144_v36 }
   0xf   :  { %231 = vmatmul.msk.f32.vlgmr.msra.gmra.mxu2 %vm40_vm0, %v30_v4  ;;  %237 = vmatpush.msra.mxu3 %v143_v38 }
  0x10   :  { %v79_v16 = vsub.f32 1.0, %v78_v15  ;;  %166 = vmatpush.msra.mxu1 %v143_v38 }
  0x11   :  { %228 = vmatmul.msk.f32.gmra.mxu0 %vm40_vm0, %v349_v5  ;;  %238 = vmatpush.msra.mxu3 %v142_v39 }
  0x12   :  { %v80_v17 = vmul.f32 %v250_v14, %v79_v16  ;;  %167 = vmatpush.msra.mxu1 %v142_v39 }
  0x13   :  { %239 = vmatpush.msra.mxu3 %v141_v40 }
  0x14   :  { %v81_v18 = vadd.f32 %v250_v14, %v80_v17  ;;  %168 = vmatpush.msra.mxu1 %v141_v40 }
  0x15   :  { %240 = vmatpush.msra.mxu3 %v140_v41 }
  0x16   :  { %v83_v19 = vsel %vm82_vm2, %v250_v14, %v81_v18  ;;  %169 = vmatpush.msra.mxu1 %v140_v41 }
  0x17   :  { %232 = vmatmul.msk.f32.gmra.mxu2 %vm40_vm0, %v349_v5 }
  0x86   :  { %v64_v6 = vpop.f32.mrf.mxu0 }
  0x87   :  { %v65_v11 = vadd.f32 %v245_v7, %v64_v6 }
  0x89   :  { %v71_v12 = vsel %vm70_vm1, %v65_v11, 0.0 }
  0x8e   :  { %v67_v8 = vpop.f32.mrf.mxu0 }
  0x8f   :  { %v68_v9 = vadd.f32 %v245_v7, %v67_v8 }
  0x91   :  { %v74_v10 = vsel %vm70_vm1, %v68_v9, 0.0 }
  0x92   :  { %75 = vadd.xlane.f32.xlu0 %v74_v10  ;;  %v194_v8 = vpop.f32.mrf.mxu2  ;;  %v248_v10 = vld [vmem:[%s430_s7] ss:$0 sm:$0xff] }
  0x9a   :  { %72 = vadd.xlane.f32.xlu0 %v71_v12 }
 0x105   :  { %v76_v20 = vpop.xlane.xlu0 %75 }
 0x106   :  { %v85_v21 = vmul.f32 %v83_v19, %v76_v20 }
 0x108   :  { %v358_v22 = vsub.f32 %v68_v9, %v85_v21  ;;  %v197_v9 = vpop.f32.mrf.mxu2 }
 0x10a   :  { %v89_v23 = vmul.f32 %v358_v22, %v358_v22 }
 0x10c   :  { %v93_v24 = vsel %vm70_vm1, %v89_v23, 0.0 }
 0x10d   :  { %94 = vadd.xlane.f32.xlu1 %v93_v24  ;;  %v73_v25 = vpop.xlane.xlu0 %72 }
 0x10e   :  { %v84_v26 = vmul.f32 %v83_v19, %v73_v25 }
 0x110   :  { %v363_v27 = vsub.f32 %v65_v11, %v84_v26 }
 0x112   :  { %v88_v28 = vmul.f32 %v363_v27, %v363_v27 }
 0x114   :  { %v90_v29 = vsel %vm70_vm1, %v88_v28, 0.0 }
 0x115   :  { %91 = vadd.xlane.f32.xlu1 %v90_v29 }
 0x180   :  { %v95_v42 = vpop.xlane.xlu1 %94 }
 0x181   :  { %v97_v43 = vmul.f32 %v95_v42, %v83_v19 }
 0x183   :  { %v99_v44 = vadd.f32 1e-05, %v97_v43 }
 0x185   :  { %251 = vrsqrt.f32 %v99_v44  ;;  %vm116_vm4 = vweird.f32 %v99_v44 }
 0x188   :  { %v92_v45 = vpop.xlane.xlu1 %91 }
 0x189   :  { %v96_v46 = vmul.f32 %v92_v45, %v83_v19 }
 0x18b   :  { %v252_v47 = vpop.eup %251  ;;  %v98_v48 = vadd.f32 1e-05, %v96_v46 }
 0x18c   :  { %v111_v49 = vmul.f32 %v252_v47, %v99_v44  ;;  %vm117_vm3 = vweird.f32 %v252_v47 }
 0x18d   :  { %253 = vrsqrt.f32 %v98_v48  ;;  %vm118_vm5 = vmor %vm116_vm4, %vm117_vm3  ;;  %vm106_vm7 = vweird.f32 %v98_v48 }
 0x18e   :  { %v112_v50 = vmul.f32 %v252_v47, %v111_v49 }
 0x190   :  { %v113_v51 = vmul.f32 0.5, %v112_v50 }
 0x192   :  { %v114_v52 = vsub.f32 1.5, %v113_v51 }
 0x193   :  { %v254_v53 = vpop.eup %253 }
 0x194   :  { %v115_v54 = vmul.f32 %v252_v47, %v114_v52  ;;  %v101_v55 = vmul.f32 %v254_v53, %v98_v48  ;;  %vm107_vm6 = vweird.f32 %v254_v53 }
 0x195   :  { %vm108_vm8 = vmor %vm106_vm7, %vm107_vm6 }
 0x196   :  { %v119_v57 = vsel %vm118_vm5, %v252_v47, %v115_v54  ;;  %v102_v58 = vmul.f32 %v254_v53, %v101_v55 }
 0x197   :  { %v121_v59 = vmul.f32 %v119_v57, %v358_v22 }
 0x198   :  { %v103_v61 = vmul.f32 0.5, %v102_v58 }
 0x199   :  { %v127_v62 = vmul.f32 %v246_v56, %v121_v59 }
 0x19a   :  { %v104_v63 = vsub.f32 1.5, %v103_v61 }
 0x19b   :  { %v133_v0 = vadd.f32 %v247_v60, %v127_v62 }
 0x19c   :  { %v105_v1 = vmul.f32 %v254_v53, %v104_v63 }
 0x19d   :  { %v135_v2 = vmax.f32 %v133_v0, 0.0 }
 0x19e   :  { %v109_v3 = vsel %vm108_vm8, %v254_v53, %v105_v1 }
 0x19f   :  { %230 = vmatmul.msk.f32.vlgmr.msra.gmra.mxu3 %vm70_vm1, %v135_v2  ;;  %v120_v4 = vmul.f32 %v109_v3, %v363_v27 }
 0x1a1   :  { %v126_v5 = vmul.f32 %v246_v56, %v120_v4 }
 0x1a3   :  { %v132_v6 = vadd.f32 %v247_v60, %v126_v5 }
 0x1a5   :  { %v134_v7 = vmax.f32 %v132_v6, 0.0 }
 0x1a7   :  { %229 = vmatmul.msk.f32.vlgmr.msra.gmra.mxu1 %vm70_vm1, %v134_v7 }
 0x222   :  { %v174_v11 = vpop.f32.mrf.mxu3 }
 0x223   :  { %v198_v12 = vadd.f32 %v197_v9, %v174_v11 }
 0x224   :  { %v171_v13 = vpop.f32.mrf.mxu1 }
 0x225   :  { %v205_v14 = vadd.f32 %v248_v10, %v198_v12  ;;  %v195_v15 = vadd.f32 %v194_v8, %v171_v13 }
 0x227   :  { %208 = vst.msk [vmem:[#allocation2 + $0x8] sm:$0xff] %vm206_vm9, %v205_v14  ;;  %v204_v16 = vadd.f32 %v248_v10, %v195_v15 }
 0x229   :  { %207 = vst.msk [vmem:[#allocation2] sm:$0xff] %vm206_vm9, %v204_v16 }
 0x22a   :  { %221 = dma.vmem_to_hbm [thread:$0]  %s214_s18, 256, %s216_s21, [#allocation3], %s283_s22, %s283_s22, %s284_s23  }
 0x22b   :  { %279 = dma.done.wait [#allocation3], 256  }
 0x22c   :  { %280 = vsyncadd [#allocation3], 4294967040 }
 0x22d   :  { %226 = vsyncpa [#allocation3], 1 }

</bundles_post_ra>
